<compile_context>
chip_gen: v7x
topology: tpu7x:2x2x1
jax: 0.10.0
libtpu: 0.0.40
codegen_flags: <defaults>
</compile_context>

<pallas_src>
import functools

import jax
import jax.numpy as jnp
from jax import lax
from jax.experimental import pallas as pl
from jax.experimental.pallas import tpu as pltpu

EPS = 1e-5                      # nn.LayerNorm default eps
C = 4                           # nn.LayerNorm(4)
LANES = 128
GROUPS_PER_ROW = LANES // C     # 32 sequence positions per 128-lane row
DEFAULT_TILE_ROWS = 2048        # 2048 x 128 x 4B = 1 MiB per x tile


def _ln_sum_kernel(x_ref, gmat_ref, gain_ref, o_ref, acc_ref, *, eps, inv_c):
    """One (batch bi, sequence-tile si) grid step.

    x_ref:    (TR, 128) f32 tile; lane l holds channel l % 4 of a sequence position.
    gmat_ref: (128, 128) bf16 block-diagonal 0/1 matrix (group-of-4 lane sums).
    gain_ref: (1, 128) f32 gamma tiled 32x along lanes (gamma[l % 4]).
    o_ref:    (1, 128) per-batch output block, resident across the S axis.
    acc_ref:  (1, 128) f32 accumulator of sum_s z.
    """
    si = pl.program_id(1)

    @pl.when(si == 0)
    def _():
        acc_ref[...] = jnp.zeros_like(acc_ref)

    x = x_ref[...]                   # (TR, 128) f32, fully dense vregs
    gmat = gmat_ref[...]             # (128, 128) bf16

    def group_sum(v):
        # Sum over each aligned group of 4 lanes, broadcast back to the group,
        # on the MXU.  hi/lo split keeps the bf16 matmul against a 0/1 matrix
        # effectively exact (error <= ~2^-18 * |v|); exact adds everywhere else.
        hi = v.astype(jnp.bfloat16)
        lo = (v - hi.astype(jnp.float32)).astype(jnp.bfloat16)
        return (jnp.dot(hi, gmat, preferred_element_type=jnp.float32)
                + jnp.dot(lo, gmat, preferred_element_type=jnp.float32))

    mean = group_sum(x) * inv_c                     # (TR, 128), broadcast per group
    xc = x - mean
    var = group_sum(xc * xc) * inv_c                # biased variance (LayerNorm)
    z = xc * lax.rsqrt(var + eps)                   # padded rows: xc == 0 -> z == 0

    acc_ref[...] += jnp.sum(z, axis=0, keepdims=True)   # exact sublane reduce

    @pl.when(si == pl.num_programs(1) - 1)
    def _():
        # gamma applied once to the tiny accumulator; group fold + S*beta happen
        # on the (B, 128) result in the wrapper.
        o_ref[...] = gain_ref[...] * acc_ref[...]


def layernorm3d_sum(x, gamma, beta, *, eps=EPS, tile_rows=None):
    """x: (B, S, 4); gamma/beta: (4,).  Returns LayerNorm(x).sum(dim=1) -> (B, 4)."""
    B, S, c = x.shape
    if c != C:
        raise ValueError(f"expected last dim {C}, got {c}")

    if tile_rows is None:
        tile_rows = DEFAULT_TILE_ROWS
    tile_rows = max(8, (tile_rows // 8) * 8)        # sublane-aligned S tiles

    # Rows of 128 lanes needed; pad so every tile is full and sublane-aligned.
    r = pl.cdiv(S * C, LANES)
    if r <= tile_rows:
        tr = r_pad = pl.cdiv(r, 8) * 8
    else:
        tr = tile_rows
        r_pad = pl.cdiv(r, tr) * tr
    n_st = r_pad // tr

    flat = x.reshape(B, S * C).astype(jnp.float32)  # free reshape (row-major)
    pad = r_pad * LANES - S * C
    if pad:
        flat = jnp.pad(flat, ((0, 0), (0, pad)))    # zeros -> z == 0, no contribution
    xg = flat.reshape(B, r_pad, LANES)

    lane = jnp.arange(LANES)
    gmat = (lane[:, None] // C == lane[None, :] // C).astype(jnp.bfloat16)
    gain = jnp.tile(jnp.asarray(gamma, jnp.float32), GROUPS_PER_ROW).reshape(1, LANES)

    kernel = functools.partial(_ln_sum_kernel, eps=eps, inv_c=1.0 / C)

    out = pl.pallas_call(
        kernel,
        out_shape=jax.ShapeDtypeStruct((B, 1, LANES), jnp.float32),
        grid=(B, n_st),
        in_specs=[
            pl.BlockSpec((pl.Squeezed(), tr, LANES), lambda bi, si: (bi, si, 0)),
            pl.BlockSpec((LANES, LANES), lambda bi, si: (0, 0)),
            pl.BlockSpec((1, LANES), lambda bi, si: (0, 0)),
        ],
        out_specs=pl.BlockSpec((pl.Squeezed(), 1, LANES), lambda bi, si: (bi, 0, 0)),
        scratch_shapes=[pltpu.VMEM((1, LANES), jnp.float32)],
        compiler_params=pltpu.CompilerParams(
            dimension_semantics=("parallel", "arbitrary")),
    )(xg, gmat, gain)

    # Fold the 32 lane-groups back onto the 4 channels and add the folded bias:
    #   sum_s (z*gamma + beta) = gamma * sum_s z + S * beta
    zsum = out.reshape(B, GROUPS_PER_ROW, C).sum(axis=1)
    return zsum + S * jnp.asarray(beta, jnp.float32)


def _reference(x, gamma, beta, eps=EPS):
    x = x.astype(jnp.float32)
    mean = x.mean(axis=-1, keepdims=True)
    var = ((x - mean) ** 2).mean(axis=-1, keepdims=True)
    y = (x - mean) / jnp.sqrt(var + eps) * gamma + beta
    return y.sum(axis=1)


if __name__ == "__main__":
    key = jax.random.PRNGKey(0)
    kx, kg, kb, kx2 = jax.random.split(key, 4)

    # nn.LayerNorm default init is weight=1, bias=0; use non-trivial values so the
    # folded affine (gamma * acc + S * beta) is actually exercised.
    gamma = 1.0 + 0.1 * jax.random.normal(kg, (C,), dtype=jnp.float32)
    beta = 0.1 * jax.random.normal(kb, (C,), dtype=jnp.float32)

    # Small shape implied by the module: (batch, seq, 4).
    B, S = 2, 8
    x = jax.random.normal(kx, (B, S, C), dtype=jnp.float32)
    out = jax.block_until_ready(layernorm3d_sum(x, gamma, beta))
    ref = _reference(x, gamma, beta)
    assert out.shape == (B, C), out.shape
    assert jnp.allclose(out, ref, atol=1e-4, rtol=1e-4), (out, ref)

    # Larger, non-aligned S with a small tile override to exercise the multi-tile
    # accumulation + zero-padding path at runtime.
    S2 = 5000
    x2 = jax.random.normal(kx2, (B, S2, C), dtype=jnp.float32)
    out2 = jax.block_until_ready(layernorm3d_sum(x2, gamma, beta, tile_rows=64))
    ref2 = _reference(x2, gamma, beta)
    assert out2.shape == (B, C), out2.shape
    assert jnp.allclose(out2, ref2, atol=2e-3, rtol=2e-4), (out2, ref2)

    print("KERNEL_OK")
</pallas_src>

<mosaic_0001>
module attributes {stable_mosaic.version = 11 : i64} {
  func.func @_ln_sum_kernel(%arg0: i32, %arg1: i32, %arg2: memref<1x8x128xf32, #tpu.memory_space<vmem>>, %arg3: memref<128x128xbf16, #tpu.memory_space<vmem>>, %arg4: memref<1x128xf32, #tpu.memory_space<vmem>>, %arg5: memref<1x1x128xf32, #tpu.memory_space<vmem>>, %arg6: memref<1x128xf32, #tpu.memory_space<vmem>>) attributes {dimension_semantics = [#tpu.dimension_semantics<parallel>, #tpu.dimension_semantics<arbitrary>], iteration_bounds = array<i64: 2, 1>, scalar_prefetch = 0 : i64, scratch_operands = 1 : i64, tpu.core_type = #tpu.core_type<tc>, window_params = [{transform_indices = @transform_0, window_bounds = array<i64: 1, 8, 128>}, {pipeline_mode = #tpu.pipeline_mode<synchronous>, transform_indices = @transform_1, window_bounds = array<i64: 128, 128>}, {pipeline_mode = #tpu.pipeline_mode<synchronous>, transform_indices = @transform_2, window_bounds = array<i64: 1, 128>}, {transform_indices = @transform_3, window_bounds = array<i64: 1, 1, 128>}]} {
    %c0_i32 = arith.constant 0 : i32
    %0 = arith.cmpi eq, %arg1, %c0_i32 : i32
    %1 = arith.extui %0 : i1 to i32
    %c0_i32_0 = arith.constant 0 : i32
    %2 = arith.cmpi ne, %1, %c0_i32_0 : i32
    scf.if %2 {
      %cst_18 = arith.constant 0.000000e+00 : f32
      %38 = vector.broadcast %cst_18 : f32 to vector<1x128xf32>
      %c0_19 = arith.constant 0 : index
      %c0_20 = arith.constant 0 : index
      %39 = vector.load %arg6[%c0_19, %c0_20] : memref<1x128xf32, #tpu.memory_space<vmem>>, vector<1x128xf32>
      tpu.vector_store %arg6[%c0_19, %c0_20], %38 {strides = array<i32>} : memref<1x128xf32, #tpu.memory_space<vmem>>, vector<1x128xf32>,
    } else {
    }
    %c0 = arith.constant 0 : index
    %c0_1 = arith.constant 0 : index
    %c0_2 = arith.constant 0 : index
    %3 = vector.load %arg2[%c0, %c0_1, %c0_2] : memref<1x8x128xf32, #tpu.memory_space<vmem>>, vector<1x8x128xf32>
    %4 = vector.shape_cast %3 : vector<1x8x128xf32> to vector<8x128xf32>
    %c0_3 = arith.constant 0 : index
    %c0_4 = arith.constant 0 : index
    %5 = vector.load %arg3[%c0_3, %c0_4] : memref<128x128xbf16, #tpu.memory_space<vmem>>, vector<128x128xbf16>
    %6 = arith.truncf %4 : vector<8x128xf32> to vector<8x128xbf16>
    %7 = arith.extf %6 : vector<8x128xbf16> to vector<8x128xf32>
    %8 = arith.subf %4, %7 : vector<8x128xf32>
    %9 = arith.truncf %8 : vector<8x128xf32> to vector<8x128xbf16>
    %cst = arith.constant dense<0.000000e+00> : vector<8x128xf32>
    %10 = tpu.matmul %6, %5, %cst {dimension_numbers = #tpu.dot_dimension_numbers<[1], [0], [0], [1], [0, 0, 1, 1], [], []>} : vector<8x128xbf16>, vector<128x128xbf16>, vector<8x128xf32> -> vector<8x128xf32>
    %cst_5 = arith.constant dense<0.000000e+00> : vector<8x128xf32>
    %11 = tpu.matmul %9, %5, %cst_5 {dimension_numbers = #tpu.dot_dimension_numbers<[1], [0], [0], [1], [0, 0, 1, 1], [], []>} : vector<8x128xbf16>, vector<128x128xbf16>, vector<8x128xf32> -> vector<8x128xf32>
    %12 = arith.addf %10, %11 : vector<8x128xf32>
    %cst_6 = arith.constant 2.500000e-01 : f32
    %13 = vector.broadcast %cst_6 : f32 to vector<8x128xf32>
    %14 = arith.mulf %12, %13 : vector<8x128xf32>
    %15 = arith.subf %4, %14 : vector<8x128xf32>
    %16 = arith.mulf %15, %15 : vector<8x128xf32>
    %17 = arith.truncf %16 : vector<8x128xf32> to vector<8x128xbf16>
    %18 = arith.extf %17 : vector<8x128xbf16> to vector<8x128xf32>
    %19 = arith.subf %16, %18 : vector<8x128xf32>
    %20 = arith.truncf %19 : vector<8x128xf32> to vector<8x128xbf16>
    %cst_7 = arith.constant dense<0.000000e+00> : vector<8x128xf32>
    %21 = tpu.matmul %17, %5, %cst_7 {dimension_numbers = #tpu.dot_dimension_numbers<[1], [0], [0], [1], [0, 0, 1, 1], [], []>} : vector<8x128xbf16>, vector<128x128xbf16>, vector<8x128xf32> -> vector<8x128xf32>
    %cst_8 = arith.constant dense<0.000000e+00> : vector<8x128xf32>
    %22 = tpu.matmul %20, %5, %cst_8 {dimension_numbers = #tpu.dot_dimension_numbers<[1], [0], [0], [1], [0, 0, 1, 1], [], []>} : vector<8x128xbf16>, vector<128x128xbf16>, vector<8x128xf32> -> vector<8x128xf32>
    %23 = arith.addf %21, %22 : vector<8x128xf32>
    %cst_9 = arith.constant 2.500000e-01 : f32
    %24 = vector.broadcast %cst_9 : f32 to vector<8x128xf32>
    %25 = arith.mulf %23, %24 : vector<8x128xf32>
    %cst_10 = arith.constant 9.99999974E-6 : f32
    %26 = vector.broadcast %cst_10 : f32 to vector<8x128xf32>
    %27 = arith.addf %25, %26 : vector<8x128xf32>
    %28 = math.rsqrt %27 : vector<8x128xf32>
    %29 = arith.mulf %15, %28 : vector<8x128xf32>
    %c0_11 = arith.constant 0 : index
    %c0_12 = arith.constant 0 : index
    %30 = vector.load %arg6[%c0_11, %c0_12] : memref<1x128xf32, #tpu.memory_space<vmem>>, vector<1x128xf32>
    %cst_13 = arith.constant dense<0.000000e+00> : vector<128xf32>
    %31 = vector.multi_reduction <add>, %29, %cst_13 [0] : vector<8x128xf32> to vector<128xf32>
    %32 = vector.shape_cast %31 : vector<128xf32> to vector<1x128xf32>
    %33 = arith.addf %30, %32 : vector<1x128xf32>
    %c0_14 = arith.constant 0 : index
    %c0_15 = arith.constant 0 : index
    %34 = vector.load %arg6[%c0_14, %c0_15] : memref<1x128xf32, #tpu.memory_space<vmem>>, vector<1x128xf32>
    tpu.vector_store %arg6[%c0_14, %c0_15], %33 {strides = array<i32>} : memref<1x128xf32, #tpu.memory_space<vmem>>, vector<1x128xf32>,
    %c0_i32_16 = arith.constant 0 : i32
    %35 = arith.cmpi eq, %arg1, %c0_i32_16 : i32
    %36 = arith.extui %35 : i1 to i32
    %c0_i32_17 = arith.constant 0 : i32
    %37 = arith.cmpi ne, %36, %c0_i32_17 : i32
    scf.if %37 {
      %c0_18 = arith.constant 0 : index
      %c0_19 = arith.constant 0 : index
      %38 = vector.load %arg4[%c0_18, %c0_19] : memref<1x128xf32, #tpu.memory_space<vmem>>, vector<1x128xf32>
      %c0_20 = arith.constant 0 : index
      %c0_21 = arith.constant 0 : index
      %39 = vector.load %arg6[%c0_20, %c0_21] : memref<1x128xf32, #tpu.memory_space<vmem>>, vector<1x128xf32>
      %40 = arith.mulf %38, %39 : vector<1x128xf32>
      %c0_22 = arith.constant 0 : index
      %c0_23 = arith.constant 0 : index
      %c0_24 = arith.constant 0 : index
      %41 = vector.load %arg5[%c0_22, %c0_23, %c0_24] : memref<1x1x128xf32, #tpu.memory_space<vmem>>, vector<1x1x128xf32>
      %42 = vector.shape_cast %41 : vector<1x1x128xf32> to vector<1x128xf32>
      %43 = vector.shape_cast %40 : vector<1x128xf32> to vector<1x1x128xf32>
      tpu.vector_store %arg5[%c0_22, %c0_23, %c0_24], %43 {strides = array<i32>} : memref<1x1x128xf32, #tpu.memory_space<vmem>>, vector<1x1x128xf32>,
    } else {
    }
    return
  }
  func.func @transform_0(%arg0: i32, %arg1: i32) -> (i32, i32, i32) {
    %c0_i32 = arith.constant 0 : i32
    %c0_i32_0 = arith.constant 0 : i32
    return %arg0, %arg1, %c0_i32 : i32, i32, i32
  }
  func.func @transform_1(%arg0: i32, %arg1: i32) -> (i32, i32) {
    %c0_i32 = arith.constant 0 : i32
    %c0_i32_0 = arith.constant 0 : i32
    %c0_i32_1 = arith.constant 0 : i32
    return %c0_i32, %c0_i32_0 : i32, i32
  }
  func.func @transform_2(%arg0: i32, %arg1: i32) -> (i32, i32) {
    %c0_i32 = arith.constant 0 : i32
    %c0_i32_0 = arith.constant 0 : i32
    %c0_i32_1 = arith.constant 0 : i32
    return %c0_i32, %c0_i32_0 : i32, i32
  }
  func.func @transform_3(%arg0: i32, %arg1: i32) -> (i32, i32, i32) {
    %c0_i32 = arith.constant 0 : i32
    %c0_i32_0 = arith.constant 0 : i32
    %c0_i32_1 = arith.constant 0 : i32
    return %arg0, %c0_i32, %c0_i32_0 : i32, i32, i32
  }
}

</mosaic_0001>

<bundles_post_ra>
// kernel: tpu_custom_call.1
= control target key start
LH: loop header
LB: loop body
LE: loop exit
PB: predicated region body
PF: predicated region fallthrough
CT: control target
= control target key end

     0   :  { %8 = vsyncpa [#allocation4], 0  ;;  %s1269_s0 = inlined_call_operand.hbm [shape: f32[2,8,128], index: 0, kind: input, shape index: {}]   ;;  %s1270_s1 = inlined_call_operand.hbm [shape: bf16[128,128], index: 1, kind: input, shape index: {}]   ;;  %s1271_s2 = inlined_call_operand.vmem [shape: f32[1,128], index: 2, kind: input, shape index: {}]   ;;  %s1272_s3 = inlined_call_operand.hbm [shape: f32[2,1,128], index: 3, kind: output, shape index: {}]  }
   0x1   :  { %10 = vsyncpa [#allocation4 + $0x1], 0 }
   0x2   :  { %11 = vsyncpa [#allocation7], 0 }
   0x3   :  { %12 = vsyncpa [#allocation5], 0 }
   0x4   :  { %14 = vsyncpa [#allocation5 + $0x1], 0  ;;  %s980_s12 = smov 0   ;;  %s982_s13 = smov 0  }
   0x5   :  { %s984_s14 = smov 0   ;;  %s986_s15 = smov 0  }
   0x6   :  { %s988_s16 = smov 0   ;;  %s990_s17 = smov 0  }
   0x7 LB: > { %s575_s18 = sadd.s32 4294967295, %s951_s17   ;;  %s576_s19 = sadd.s32 4294967294, %s951_s17   ;;  %s951_s17 = sphi %s990_s17, %s20_s17   ;;  %s947_s16 = sphi %s988_s16, %s1296_s16   ;;  %s943_s15 = sphi %s986_s15, %s1295_s15   ;;  %s939_s14 = sphi %s984_s14, %s1294_s14   ;;  %s935_s13 = sphi %s982_s13, %s1293_s13   ;;  %s931_s12 = sphi %s980_s12, %s1292_s12  }
   0x8   : > { %p54_p0 = scmp.ne.s32.totalorder %s935_s13, %s931_s12  ;;  %p1014_p1 = scmp.eq.s32.totalorder %s575_s18, 0 }
   0x9   : > { %p1018_p2 = scmp.eq.s32.totalorder %s575_s18, 1  ;;  %p126_p3 = scmp.eq.s32.totalorder %s576_s19, 1 }
   0xa   : > { %s1277_s20 = scalar_select %p1014_p1, 1, 0 }
   0xb   : > { %s1278_s21 = scalar_select %p1018_p2, 1, 0 }
   0xc   : > { %p1024_p4 = por %p1014_p1, %p54_p0  ;;  %p577_p5 = scmp.ge.s32.totalorder %s951_s17, 1 }
   0xd   : > { %p1029_p6 = por %p126_p3, %p54_p0  ;;  %p133_p7 = scmp.lt.s32.totalorder %s951_s17, 3 }
   0xe   : > { %s1279_s22 = scalar_select %p1024_p4, 1, 0 }
   0xf   : > { %s1280_s23 = scalar_select %p1029_p6, 1, 0 }
  0x10   : > { %p1034_p8 = pnand %p577_p5, %p133_p7  ;;  %s953_s25 = smov [#allocation6]  }
  0x11   : > { %s145_s26 = sshll.u32 %s953_s25, 4  ;;  %s32_s28 = sadd.s32 1, %s947_s16  ;;  %s146_s26 = int_to_ptr.vmem [resolvable:$true] %s145_s26 }
  0x12   : > { %s1281_s24 = scalar_select %p1034_p8, 1, 0 }
  0x13   : > { %p728_p9 = pneg %p1034_p8  ;;  %s807_s4 = scalar_lea.hbm %s1270_s1, 1024 }
  0x14   : > { %p808_p12 = scmp.ne.s32.totalorder %s1270_s1, %s807_s4  ;;  %p814_p5 = scmp.lt.u32.totalorder %s807_s4, %s1270_s1 }
  0x15   : > { %p1043_p11 = pnand %p728_p9, %p1014_p1 }
  0x17   : > { %p809_p13 = pneg %p1043_p11 }
  0x19   : > { %p810_p0 = pnand %p809_p13, %p808_p12 }
  0x1b   : > { %p811_p3 = pneg %p810_p0 }
  0x1d   : > { %p816_p7 = pnand %p814_p5, %p811_p3 }
  0x1f   : > { %819 = shalt.err (!%p816_p7)
}
  0x20   : > { %s820_s9 = scalar_lea.vmem %s146_s26, 1024  ;;  %p828_p1 = scmp.lt.s32.totalorder %s146_s26, %s146_s26 }
  0x21   : > { %p821_p9 = scmp.ne.s32.totalorder %s146_s26, %s820_s9  ;;  %p829_p4 = scmp.lt.s32.totalorder %s820_s9, %s820_s9 }
  0x23   : > { %p823_p10 = pnand %p821_p9, %p809_p13  ;;  %p830_p8 = por %p829_p4, %p828_p1 }
  0x25   : > { %p824_p6 = pneg %p823_p10 }
  0x27   : > { %p831_p2 = pnand %p830_p8, %p824_p6 }
  0x29   : > { %834 = shalt.err (!%p831_p2)
}
  0x2a   : > { %s954_s10 = smov 64   ;;  %s955_s11 = smov 4  }
  0x2b   : > { %731 = dma.hbm_to_vmem [thread:$0]  (!%p1043_p11), %s1270_s1, 1024, %s146_s26, [#allocation7], %s954_s10, %s954_s10, %s955_s11  }
  0x2c   : > { %p34_p1 = scmp.ge.s32.totalorder %s32_s28, 2  ;;  %s41_s25 = sadd.s32 1, %s939_s14 }
  0x2d   : > { %p48_p2 = scmp.ne.s32.totalorder %s939_s14, %s935_s13  ;;  %p49_p4 = scmp.eq.s32.totalorder %s951_s17, 0 }
  0x2e   : > { %s1298_s28 = smov (%p34_p1, %s32_s28), 0  ;;  %p1284_p8 = scmp.ne.s32.totalorder %s1278_s21, 0 }
  0x2f   : > { %p1070_p6 = por %p49_p4, %p48_p2  ;;  %s36_s27 = ssub.s32 %s947_s16, %s1298_s28 }
  0x30   : > { %p1076_p10 = por %p1284_p8, %p48_p2  ;;  %p741_p12 = scmp.lt.s32.totalorder %s951_s17, 2 }
  0x31   : > { %p39_p11 = scmp.eq.s32.totalorder %s36_s27, 0  ;;  %s162_s26 = sand.u32 1, %s939_s14  }
  0x32   : > { %s580_s4 = sshll.u32 %s162_s26, 3  ;;  %s581_s6 = sshll.u32 %s947_s16, 7 }
  0x33   : > { %s1085_s5 = scalar_select %p39_p11, %s939_s14, %s41_s25  }
  0x34   : > { %s1091_s9 = scalar_lea.hbm %s1269_s0, %s581_s6  ;;  %s166_s21 = scalar_lea.vmem [#allocation3], %s580_s4 }
  0x35   : > { %s174_s10 = sshll.u32 %s166_s21, 4  ;;  %p1097_p13 = pnand %p741_p12, %p1070_p6  ;;  %s1093_s10 = int_to_ptr.vmem [resolvable:$true] %s174_s10 }
  0x36   : > { %s163_s18 = scalar_lea.sflag [#allocation4], %s162_s26  ;;  %s835_s19 = scalar_lea.hbm %s1091_s9, 128 }
  0x37   : > { %p836_p0 = scmp.ne.s32.totalorder %s1091_s9, %s835_s19  ;;  %p837_p3 = pneg %p1097_p13 }
  0x38   : > { %s840_s4 = scalar_lea.hbm %s1269_s0, 256  ;;  %p841_p9 = scmp.lt.u32.totalorder %s1091_s9, %s1269_s0 }
  0x39   : > { %p838_p5 = pnand %p837_p3, %p836_p0  ;;  %p842_p1 = scmp.lt.u32.totalorder %s840_s4, %s835_s19 }
  0x3a   : > { %p844_p4 = scmp.lt.u32.totalorder %s835_s19, %s1091_s9 }
  0x3b   : > { %p839_p7 = pneg %p838_p5  ;;  %p843_p2 = por %p842_p1, %p841_p9 }
  0x3d   : > { %p845_p6 = por %p844_p4, %p843_p2 }
  0x3f   : > { %p846_p8 = pnand %p845_p6, %p839_p7 }
  0x41   : > { %849 = shalt.err (!%p846_p8)
}
  0x42   : > { %s850_s26 = scalar_lea.vmem %s1093_s10, 128  ;;  %s956_s7 = smov [#allocation3]  }
  0x43   : > { %p851_p12 = scmp.ne.s32.totalorder %s1093_s10, %s850_s26  ;;  %s855_s8 = sshll.u32 %s956_s7, 4  ;;  %s856_s8 = int_to_ptr.vmem [resolvable:$false] %s855_s8 }
  0x44   : > { %s857_s21 = scalar_lea.vmem %s856_s8, 256  ;;  %p858_p5 = scmp.lt.s32.totalorder %s1093_s10, %s856_s8 }
  0x45   : > { %p853_p11 = pnand %p851_p12, %p837_p3  ;;  %p859_p9 = scmp.lt.s32.totalorder %s857_s21, %s850_s26 }
  0x47   : > { %p854_p0 = pneg %p853_p11  ;;  %p860_p1 = por %p859_p9, %p858_p5 }
  0x49   : > { %p861_p2 = pnand %p860_p1, %p854_p0 }
  0x4b   : > { %864 = shalt.err (!%p861_p2)
}
  0x4c   : > { %735 = dma.hbm_to_vmem [thread:$0]  (!%p1097_p13), %s1091_s9, 128, %s1093_s10, %s163_s18  }
  0x4d   : > { %p1287_p7 = scmp.ne.s32.totalorder %s1281_s24, 0 }
  0x4e   : > { %s1129_s19 = sand.u32 (!%p1287_p7), 1, %s935_s13   ;;  %p1288_p3 = scmp.ne.s32.totalorder (!%p1287_p7), %s1279_s22, 0 }
  0x4f   : > { %183 = sbr.rel (%p1287_p7) target bundleno = 681 (0x2a9), region = 32  ;;  %s583_s25 = sshll.u32 (!%p1287_p7), %s1129_s19, 3 }
  0x50   : > { %s186_s27 = scalar_lea.sflag (!%p1287_p7), [#allocation4], %s1129_s19  ;;  %s189_s4 = scalar_lea.vmem (!%p1287_p7), [#allocation3], %s583_s25 }
  0x56   : > { %918 = dma.done.wait (%p1288_p3), %s186_s27, 128  }
  0x57   : > { %920 = vsyncadd (%p1288_p3), %s186_s27, 4294967168  ;;  %p1289_p4 = scmp.ne.s32.totalorder %s1277_s20, 0 }
  0x59   : > { %922 = dma.done.wait (%p1289_p4), [#allocation7], 1024  }
  0x5a   : > { %924 = vsyncadd (%p1289_p4), [#allocation7], 4294966272  ;;  %v957_v0 = vmov 0.0   ;;  %vm958_vm0 = vmmov 0   ;;  %v1148_v1 = vld [vmem:[#allocation6] sm:$0xff]   ;;  %v1151_v2 = vld [vmem:[#allocation6 + $0x8] sm:$0xff]  }
  0x5b   : > { %632 = vmatprep.subr.bf16.mxu0 %v957_v0  ;;  %220 = vst [vmem:[#allocation2] sm:$0x1] %v957_v0  ;;  %648 = vmatprep.mubr.msk.bf16.mxu0 %vm958_vm0, %v957_v0  ;;  %v1157_v3 = vld [vmem:[#allocation6 + $0x10] sm:$0xff]   ;;  %v1163_v4 = vld [vmem:[#allocation6 + $0x18] sm:$0xff]   ;;  %v1169_v5 = vld [vmem:[#allocation6 + $0x20] sm:$0xff]   ;;  %s593_s24 = sshll.u32 %s943_s15, 4 }
  0x5c   : > { %672 = vmatprep.subr.bf16.mxu1 %v957_v0  ;;  %688 = vmatprep.mubr.msk.bf16.mxu1 %vm958_vm0, %v957_v0  ;;  %v221_v6 = vld [vmem:[%s189_s4] sm:$0xff]  ;;  %v802_v8 = vld [vmem:[#allocation6 + $0x28] sm:$0xff]   ;;  %s214_s9 = scalar_lea.vmem [#allocation8], %s1129_s19  ;;  %s1220_s29 = scalar_lea.hbm %s1272_s3, %s593_s24 }
  0x5d   : > { %633 = vmatpush3.bf16.msra.mxu0 %v1148_v1  ;;  %673 = vmatpush3.bf16.msra.mxu1 %v1148_v1  ;;  %v238_v7 = vpack.c.bf16 %v221_v6, %v221_v6  ;;  %v803_v10 = vld [vmem:[#allocation6 + $0x30] sm:$0xff]   ;;  %v804_v12 = vld [vmem:[#allocation6 + $0x38] sm:$0xff]   ;;  %v473_v41 = vld [vmem:[%s1271_s2] sm:$0x1]  ;;  %s490_s10 = sshll.u32 %s214_s9, 4  ;;  %s478_s6 = scalar_lea.sflag [#allocation5], %s1129_s19  ;;  %s1222_s10 = int_to_ptr.vmem [resolvable:$true] %s490_s10 }
  0x5e   : > { %634 = vmatprep.subr.bf16.mxu0 %v957_v0  ;;  %674 = vmatprep.subr.bf16.mxu1 %v957_v0  ;;  %s865_s26 = scalar_lea.vmem %s1222_s10, 16  ;;  %s959_s15 = smov [#allocation8]  }
  0x5f   : > { %v239_v9 = vunpack.c.l.bf16 %v238_v7  ;;  %p866_p13 = scmp.ne.s32.totalorder %s1222_s10, %s865_s26  ;;  %s869_s7 = sshll.u32 %s959_s15, 4  ;;  %s870_s7 = int_to_ptr.vmem [resolvable:$false] %s869_s7 }
  0x60   : > { %s871_s8 = scalar_lea.vmem %s870_s7, 32  ;;  %p872_p12 = scmp.lt.s32.totalorder %s1222_s10, %s870_s7 }
  0x61   : > { %635 = vmatpush3.bf16.msra.mxu0 %v1151_v2  ;;  %675 = vmatpush3.bf16.msra.mxu1 %v1151_v2  ;;  %v240_v11 = vsub.f32 %v221_v6, %v239_v9  ;;  %p867_p6 = pnand %p866_p13, %p1076_p10  ;;  %p873_p11 = scmp.lt.s32.totalorder %s871_s8, %s865_s26 }
  0x62   : > { %636 = vmatprep.subr.bf16.mxu0 %v957_v0  ;;  %676 = vmatprep.subr.bf16.mxu1 %v957_v0  ;;  %v461_v38 = vld [vmem:[#allocation2] sm:$0x1] }
  0x63   : > { %v241_v13 = vpack.c.bf16 %v240_v11, %v240_v11  ;;  %p868_p8 = pneg %p867_p6  ;;  %p874_p0 = por %p873_p11, %p872_p12 }
  0x65   : > { %637 = vmatpush3.bf16.msra.mxu0 %v1157_v3  ;;  %677 = vmatpush3.bf16.msra.mxu1 %v1157_v3  ;;  %p875_p5 = pnand %p874_p0, %p868_p8 }
  0x66   : > { %638 = vmatprep.subr.bf16.mxu0 %v957_v0  ;;  %678 = vmatprep.subr.bf16.mxu1 %v957_v0 }
  0x69   : > { %639 = vmatpush3.bf16.msra.mxu0 %v1163_v4  ;;  %679 = vmatpush3.bf16.msra.mxu1 %v1163_v4 }
  0x6a   : > { %640 = vmatprep.subr.bf16.mxu0 %v957_v0  ;;  %680 = vmatprep.subr.bf16.mxu1 %v957_v0 }
  0x6d   : > { %641 = vmatpush3.bf16.msra.mxu0 %v1169_v5  ;;  %681 = vmatpush3.bf16.msra.mxu1 %v1169_v5 }
  0x6e   : > { %642 = vmatprep.subr.bf16.mxu0 %v957_v0  ;;  %682 = vmatprep.subr.bf16.mxu1 %v957_v0 }
  0x71   : > { %643 = vmatpush3.bf16.msra.mxu0 %v802_v8  ;;  %683 = vmatpush3.bf16.msra.mxu1 %v802_v8 }
  0x72   : > { %644 = vmatprep.subr.bf16.mxu0 %v957_v0  ;;  %684 = vmatprep.subr.bf16.mxu1 %v957_v0 }
  0x75   : > { %645 = vmatpush3.bf16.msra.mxu0 %v803_v10  ;;  %685 = vmatpush3.bf16.msra.mxu1 %v803_v10 }
  0x76   : > { %646 = vmatprep.subr.bf16.mxu0 %v957_v0  ;;  %686 = vmatprep.subr.bf16.mxu1 %v957_v0 }
  0x79   : > { %647 = vmatpush3.bf16.msra.mxu0 %v804_v12  ;;  %687 = vmatpush3.bf16.msra.mxu1 %v804_v12 }
  0x7a   : > { %652 = vmatprep.subr.bf16.mxu0 %v957_v0  ;;  %692 = vmatprep.subr.bf16.mxu1 %v957_v0 }
  0x7c   : > { %649 = vmatmul.mubr.bf16.vlgmr.msra.gmra.mrb[0].mxu0 %v241_v13 }
  0x7d   : > { %653 = vmatpush3.bf16.msra.mxu0 %v1148_v1  ;;  %668 = vmatprep.mubr.msk.bf16.mxu0 %vm958_vm0, %v957_v0 }
  0x7e   : > { %654 = vmatprep.subr.bf16.mxu0 %v957_v0 }
  0x81   : > { %655 = vmatpush3.bf16.msra.mxu0 %v1151_v2 }
  0x82   : > { %656 = vmatprep.subr.bf16.mxu0 %v957_v0 }
  0x85   : > { %657 = vmatpush3.bf16.msra.mxu0 %v1157_v3 }
  0x86   : > { %658 = vmatprep.subr.bf16.mxu0 %v957_v0 }
  0x89   : > { %659 = vmatpush3.bf16.msra.mxu0 %v1163_v4 }
  0x8a   : > { %660 = vmatprep.subr.bf16.mxu0 %v957_v0 }
  0x8d   : > { %661 = vmatpush3.bf16.msra.mxu0 %v1169_v5 }
  0x8e   : > { %662 = vmatprep.subr.bf16.mxu0 %v957_v0 }
  0x91   : > { %663 = vmatpush3.bf16.msra.mxu0 %v802_v8 }
  0x92   : > { %664 = vmatprep.subr.bf16.mxu0 %v957_v0 }
  0x95   : > { %665 = vmatpush3.bf16.msra.mxu0 %v803_v10 }
  0x96   : > { %666 = vmatprep.subr.bf16.mxu0 %v957_v0 }
  0x99   : > { %667 = vmatpush3.bf16.msra.mxu0 %v804_v12 }
  0x9c   : > { %669 = vmatmul.mubr.bf16.vlgmr.msra.gmra.mrb[0].mxu0 %v238_v7 }
 0x16f   : > { %v364_v14 = vpop.f32.mrb[0].mxu0 }
 0x170   : > { %v370_v15 = vmul.f32 0.25, %v364_v14  ;;  %v670_v16 = vpop.f32.mrb[1].mxu0 }
 0x171   : > { %v367_v17 = vpop.f32.mrb[2].mxu0 }
 0x172   : > { %v371_v18 = vsub.f32 %v221_v6, %v370_v15  ;;  %v671_v19 = vpop.f32.mrb[3].mxu0 }
 0x174   : > { %v372_v20 = vmul.f32 %v371_v18, %v371_v18 }
 0x176   : > { %v373_v21 = vpack.c.bf16 %v372_v20, %v372_v20 }
 0x178   : > { %v374_v22 = vunpack.c.l.bf16 %v373_v21 }
 0x17a   : > { %v375_v23 = vsub.f32 %v372_v20, %v374_v22 }
 0x17c   : > { %v376_v24 = vpack.c.bf16 %v375_v23, %v375_v23 }
 0x17e   : > { %689 = vmatmul.mubr.bf16.vlgmr.msra.gmra.mrb[0].mxu1 %v376_v24 }
 0x17f   : > { %693 = vmatpush3.bf16.msra.mxu1 %v1148_v1  ;;  %708 = vmatprep.mubr.msk.bf16.mxu1 %vm958_vm0, %v957_v0 }
 0x180   : > { %694 = vmatprep.subr.bf16.mxu1 %v957_v0 }
 0x183   : > { %695 = vmatpush3.bf16.msra.mxu1 %v1151_v2 }
 0x184   : > { %696 = vmatprep.subr.bf16.mxu1 %v957_v0 }
 0x187   : > { %697 = vmatpush3.bf16.msra.mxu1 %v1157_v3 }
 0x188   : > { %698 = vmatprep.subr.bf16.mxu1 %v957_v0 }
 0x18b   : > { %699 = vmatpush3.bf16.msra.mxu1 %v1163_v4 }
 0x18c   : > { %700 = vmatprep.subr.bf16.mxu1 %v957_v0 }
 0x18f   : > { %701 = vmatpush3.bf16.msra.mxu1 %v1169_v5 }
 0x190   : > { %702 = vmatprep.subr.bf16.mxu1 %v957_v0 }
 0x193   : > { %703 = vmatpush3.bf16.msra.mxu1 %v802_v8 }
 0x194   : > { %704 = vmatprep.subr.bf16.mxu1 %v957_v0 }
 0x197   : > { %705 = vmatpush3.bf16.msra.mxu1 %v803_v10 }
 0x198   : > { %706 = vmatprep.subr.bf16.mxu1 %v957_v0 }
 0x19b   : > { %707 = vmatpush3.bf16.msra.mxu1 %v804_v12 }
 0x19e   : > { %709 = vmatmul.mubr.bf16.vlgmr.msra.gmra.mrb[0].mxu1 %v373_v21 }
 0x271   : > { %v451_v25 = vpop.f32.mrb[0].mxu1 }
 0x272   : > { %v457_v26 = vmul.f32 0.25, %v451_v25  ;;  %v710_v27 = vpop.f32.mrb[1].mxu1 }
 0x273   : > { %v454_v28 = vpop.f32.mrb[2].mxu1 }
 0x274   : > { %v458_v29 = vadd.f32 1e-05, %v457_v26  ;;  %v711_v30 = vpop.f32.mrb[3].mxu1 }
 0x276   : > { %805 = vrsqrt.f32 %v458_v29 }
 0x280   : > { %v806_v31 = vpop.eup %805 }
 0x281   : > { %v460_v32 = vmul.f32 %v806_v31, %v371_v18 }
 0x283   : > { %v462_v33 = vrot.slane %v460_v32, 4 }
 0x285   : > { %v463_v34 = vadd.f32 %v462_v33, %v460_v32 }
 0x287   : > { %v464_v35 = vrot.slane %v463_v34, 2 }
 0x289   : > { %v465_v36 = vadd.f32 %v464_v35, %v463_v34 }
 0x28b   : > { %v466_v37 = vrot.slane %v465_v36, 1 }
 0x28d   : > { %v467_v39 = vadd.f32 %v466_v37, %v465_v36 }
 0x28f   : > { %v468_v40 = vadd.f32 %v467_v39, %v461_v38 }
 0x291   : > { %469 = vst [vmem:[#allocation2] sm:$0x1] %v468_v40 }
 0x298   : > { %v474_v42 = vld [vmem:[#allocation2] sm:$0x1] }
 0x299   : > { %v475_v43 = vmul.f32 %v474_v42, %v473_v41 }
 0x29b   : > { %476 = vst [vmem:[%s214_s9] sm:$0x1] %v475_v43 }
 0x29c   : > { %878 = shalt.err (!%p875_p5)
}
 0x29d   : > { %s879_s21 = scalar_lea.hbm %s1220_s29, 16  ;;  %s883_s27 = scalar_lea.hbm %s1272_s3, 32 }
 0x29e   : > { %p880_p9 = scmp.ne.s32.totalorder %s1220_s29, %s879_s21  ;;  %p884_p7 = scmp.lt.u32.totalorder %s1220_s29, %s1272_s3 }
 0x29f   : > { %p885_p3 = scmp.lt.u32.totalorder %s883_s27, %s879_s21  ;;  %p887_p13 = scmp.lt.u32.totalorder %s879_s21, %s1220_s29 }
 0x2a0   : > { %p881_p1 = pnand %p880_p9, %p1076_p10 }
 0x2a1   : > { %p886_p4 = por %p885_p3, %p884_p7 }
 0x2a2   : > { %p882_p2 = pneg %p881_p1 }
 0x2a3   : > { %p888_p6 = por %p887_p13, %p886_p4 }
 0x2a5   : > { %p889_p8 = pnand %p888_p6, %p882_p2 }
 0x2a7   : > { %892 = shalt.err (!%p889_p8)
}
 0x2a8   : > { %726 = dma.vmem_to_hbm [thread:$0]  (%p1076_p10), %s1222_s10, 16, %s1220_s29, %s478_s6  }
 0x2a9 PF: > { %s502_s22 = sand.u32 1, %s931_s12   ;;  %p1290_p12 = scmp.ne.s32.totalorder %s1280_s23, 0 }
 0x2aa   : > { %p1291_p11 = scmp.ge.s32.totalorder %s951_s17, 2  ;;  %s503_s24 = scalar_lea.sflag [#allocation5], %s502_s22 }
 0x2ac   : > { %p737_p0 = pnand %p1291_p11, %p1290_p12 }
 0x2ae   : > { %926 = dma.done.wait (!%p737_p0), %s503_s24, 16  }
 0x2af   : > { %928 = vsyncadd (!%p737_p0), %s503_s24, 4294967280  ;;  %s20_s17 = sadd.s32 1, %s951_s17   ;;  %s1292_s12 = smov %s935_s13 }
 0x2b0   : > { %p17_p5 = scmp.ge.s32.totalorder %s20_s17, 4   ;;  %s1293_s13 = smov %s939_s14 }
 0x2b1   : > { %s1294_s14 = smov %s1085_s5  ;;  %s1295_s15 = smov %s947_s16 }
 0x2b2   : > { %s1296_s16 = smov %s1298_s28  ;;  %19 = sbr.rel (!%p17_p5) target bundleno = 7 (0x7), region = 89 }
 0x2b9   :  { %507 = vsyncpa [#allocation4], 1 }
 0x2ba   :  { %509 = vsyncpa [#allocation4 + $0x1], 1 }
 0x2bb   :  { %510 = vsyncpa [#allocation7], 1 }
 0x2bc   :  { %511 = vsyncpa [#allocation5], 1 }
 0x2bd   :  { %513 = vsyncpa [#allocation5 + $0x1], 1 }

</bundles_post_ra>
